<compile_context>
chip_gen: v7x
topology: tpu7x:2x2x1
jax: 0.10.0
libtpu: 0.0.40
codegen_flags: <defaults>
</compile_context>

<pallas_src>
import functools

import jax
import jax.numpy as jnp
from jax.experimental import pallas as pl
from jax.experimental.pallas import tpu as pltpu


def _linear_relu_kernel(x_ref, w_ref, b_ref, o_ref):
    # x_ref: [tile_b, D_in], w_ref: [D_in, D_out], b_ref: [1, D_out]
    y = jnp.dot(x_ref[...], w_ref[...], preferred_element_type=jnp.float32)
    y = y + b_ref[...]
    o_ref[...] = jnp.maximum(y, 0.0).astype(o_ref.dtype)


@functools.partial(jax.jit, static_argnames=("max_tile_b",))
def global_logistic_forward(x, w_t, b, *, max_tile_b=1024):
    """relu(x @ w_t + b).

    x:   [B, D_in]     f32
    w_t: [D_in, D_out] f32   (PyTorch weight transposed)
    b:   [D_out]       f32
    returns [B, D_out] f32
    """
    B, D_in = x.shape
    D_out = w_t.shape[1]
    b2 = b.reshape(1, D_out)

    # Row tile: multiple of 8 (sublane), capped at max_tile_b.
    padded_min = pl.cdiv(B, 8) * 8
    tile_b = min(max_tile_b, padded_min)
    padded_b = pl.cdiv(B, tile_b) * tile_b
    if padded_b != B:
        x = jnp.pad(x, ((0, padded_b - B), (0, 0)))

    grid = (padded_b // tile_b,)

    out = pl.pallas_call(
        _linear_relu_kernel,
        out_shape=jax.ShapeDtypeStruct((padded_b, D_out), x.dtype),
        grid_spec=pl.GridSpec(
            grid=grid,
            in_specs=[
                pl.BlockSpec((tile_b, D_in), lambda i: (i, 0)),   # stream x
                pl.BlockSpec((D_in, D_out), lambda i: (0, 0)),    # resident W
                pl.BlockSpec((1, D_out), lambda i: (0, 0)),       # resident b
            ],
            out_specs=pl.BlockSpec((tile_b, D_out), lambda i: (i, 0)),
        ),
        compiler_params=pltpu.CompilerParams(
            dimension_semantics=("parallel",),
        ),
    )(x, w_t, b2)

    if padded_b != B:
        out = out[:B]
    return out


def _reference(x, w_t, b):
    return jnp.maximum(x @ w_t + b[None, :], 0.0)


if __name__ == "__main__":
    key = jax.random.PRNGKey(0)
    kx, kw, kb, kx2 = jax.random.split(key, 4)

    input_dim = 13
    output_dim = 5

    # Deterministic synthetic parameters (nn.Linear(13, 5) shapes).
    # PyTorch stores weight as [out, in]; keep the transposed [in, out] copy.
    w = jax.random.uniform(kw, (output_dim, input_dim), jnp.float32,
                           minval=-0.3, maxval=0.3)
    b = jax.random.uniform(kb, (output_dim,), jnp.float32,
                           minval=-0.3, maxval=0.3)
    w_t = w.T

    # Small batch (matches the module's typical use): single 8-row tile.
    batch_small = 8
    x_small = jax.random.normal(kx, (batch_small, input_dim), jnp.float32)
    y_small = jax.block_until_ready(global_logistic_forward(x_small, w_t, b))
    assert y_small.shape == (batch_small, output_dim)
    assert jnp.allclose(y_small, _reference(x_small, w_t, b), atol=1e-5, rtol=1e-5)

    # Larger, non-tile-multiple batch: exercises gridding + padding path.
    batch_big = 1030
    x_big = jax.random.normal(kx2, (batch_big, input_dim), jnp.float32)
    y_big = jax.block_until_ready(global_logistic_forward(x_big, w_t, b))
    assert y_big.shape == (batch_big, output_dim)
    assert jnp.allclose(y_big, _reference(x_big, w_t, b), atol=1e-5, rtol=1e-5)

    print("KERNEL_OK")
</pallas_src>

<mosaic_0001>
module attributes {stable_mosaic.version = 11 : i64} {
  func.func @_linear_relu_kernel(%arg0: i32, %arg1: memref<8x13xf32, #tpu.memory_space<vmem>>, %arg2: memref<13x5xf32, #tpu.memory_space<vmem>>, %arg3: memref<1x5xf32, #tpu.memory_space<vmem>>, %arg4: memref<8x5xf32, #tpu.memory_space<vmem>>) attributes {dimension_semantics = [#tpu.dimension_semantics<parallel>], iteration_bounds = array<i64: 1>, scalar_prefetch = 0 : i64, scratch_operands = 0 : i64, tpu.core_type = #tpu.core_type<tc>, window_params = [{transform_indices = @transform_0, window_bounds = array<i64: 8, 13>}, {pipeline_mode = #tpu.pipeline_mode<synchronous>, transform_indices = @transform_1, window_bounds = array<i64: 13, 5>}, {pipeline_mode = #tpu.pipeline_mode<synchronous>, transform_indices = @transform_2, window_bounds = array<i64: 1, 5>}, {transform_indices = @transform_3, window_bounds = array<i64: 8, 5>}]} {
    %c0 = arith.constant 0 : index
    %c0_0 = arith.constant 0 : index
    %0 = vector.load %arg1[%c0, %c0_0] : memref<8x13xf32, #tpu.memory_space<vmem>>, vector<8x13xf32>
    %c0_1 = arith.constant 0 : index
    %c0_2 = arith.constant 0 : index
    %1 = vector.load %arg2[%c0_1, %c0_2] : memref<13x5xf32, #tpu.memory_space<vmem>>, vector<13x5xf32>
    %cst = arith.constant dense<0.000000e+00> : vector<8x5xf32>
    %2 = tpu.matmul %0, %1, %cst {dimension_numbers = #tpu.dot_dimension_numbers<[1], [0], [0], [1], [0, 0, 1, 1], [], []>} : vector<8x13xf32>, vector<13x5xf32>, vector<8x5xf32> -> vector<8x5xf32>
    %c0_3 = arith.constant 0 : index
    %c0_4 = arith.constant 0 : index
    %3 = vector.load %arg3[%c0_3, %c0_4] : memref<1x5xf32, #tpu.memory_space<vmem>>, vector<1x5xf32>
    %4 = vector.broadcast %3 : vector<1x5xf32> to vector<8x5xf32>
    %5 = arith.addf %2, %4 : vector<8x5xf32>
    %cst_5 = arith.constant 0.000000e+00 : f32
    %6 = vector.broadcast %cst_5 : f32 to vector<8x5xf32>
    %7 = arith.maximumf %5, %6 : vector<8x5xf32>
    %c0_6 = arith.constant 0 : index
    %c0_7 = arith.constant 0 : index
    %8 = vector.load %arg4[%c0_6, %c0_7] : memref<8x5xf32, #tpu.memory_space<vmem>>, vector<8x5xf32>
    tpu.vector_store %arg4[%c0_6, %c0_7], %7 {strides = array<i32>} : memref<8x5xf32, #tpu.memory_space<vmem>>, vector<8x5xf32>,
    return
  }
  func.func @transform_0(%arg0: i32) -> (i32, i32) {
    %c0_i32 = arith.constant 0 : i32
    %c0_i32_0 = arith.constant 0 : i32
    return %arg0, %c0_i32 : i32, i32
  }
  func.func @transform_1(%arg0: i32) -> (i32, i32) {
    %c0_i32 = arith.constant 0 : i32
    %c0_i32_0 = arith.constant 0 : i32
    %c0_i32_1 = arith.constant 0 : i32
    return %c0_i32, %c0_i32_0 : i32, i32
  }
  func.func @transform_2(%arg0: i32) -> (i32, i32) {
    %c0_i32 = arith.constant 0 : i32
    %c0_i32_0 = arith.constant 0 : i32
    %c0_i32_1 = arith.constant 0 : i32
    return %c0_i32, %c0_i32_0 : i32, i32
  }
  func.func @transform_3(%arg0: i32) -> (i32, i32) {
    %c0_i32 = arith.constant 0 : i32
    %c0_i32_0 = arith.constant 0 : i32
    return %arg0, %c0_i32 : i32, i32
  }
}

</mosaic_0001>

<bundles_post_ra>
// kernel: global_logistic_forward.1
= control target key start
LH: loop header
LB: loop body
LE: loop exit
PB: predicated region body
PF: predicated region fallthrough
CT: control target
= control target key end

     0   :  { %vm29_vm0 = vcmask 1044480   ;;  %v166_v2 = vmov 0.0|0.0   ;;  %vm167_vm1 = vmmov 1   ;;  %vm168_vm3 = vmmov 0   ;;  %s215_s0 = inlined_call_operand.vmem [shape: f32[8,13], index: 0, kind: input, shape index: {}]   ;;  %s216_s1 = inlined_call_operand.vmem [shape: f32[13,5], index: 1, kind: input, shape index: {}]   ;;  %s217_s2 = inlined_call_operand.vmem [shape: f32[1,5], index: 2, kind: input, shape index: {}]   ;;  %s218_s3 = inlined_call_operand.hbm [shape: f32[8,5], index: 3, kind: output, shape index: {}]  }
   0x1   :  { %v16_v0 = vld [vmem:[%s216_s1] sm:$0xff]  ;;  %v17_v1 = vld [vmem:[%s216_s1 + $0x8] sm:$0x1f]  ;;  %133 = vmatprep.subr.bf16.mxu0 %v166_v2  ;;  %vm135_vm2 = vmpackc.low %vm29_vm0, %vm167_vm1  ;;  %v169_v4 = vmov 0.0  }
   0x2   :  { %v134_v3 = vpack.c.bf16 %v17_v1, %v16_v0  ;;  %130 = vmatprep.mubr.msk.f32.mxu0 %vm168_vm3, %v169_v4 }
   0x3   :  { %8 = vsyncpa [#allocation3], 0  ;;  %v15_v5 = vld [vmem:[%s215_s0] sm:$0xff]  ;;  %vm25_vm4 = vcmask 105472   ;;  %s170_s1 = smov [#allocation2]   ;;  %vm104_vm5 = vcmask 39936  }
   0x4   :  { %136 = vmatpush3.bf16.msk.msra.mxu0 %vm135_vm2, %v134_v3  ;;  %v120_v6 = vld [vmem:[%s217_s2] ss:$0 sm:$0xff]  ;;  %s112_s20 = sshll.u32 %s170_s1, 4  ;;  %s113_s20 = int_to_ptr.vmem [resolvable:$true] %s112_s20 }
   0x5   :  { %s142_s21 = scalar_lea.vmem %s113_s20, 128  ;;  %p147_p1 = scmp.lt.s32.totalorder %s113_s20, %s113_s20 }
   0x6   :  { %p143_p0 = scmp.ne.s32.totalorder %s113_s20, %s142_s21  ;;  %p148_p2 = scmp.lt.s32.totalorder %s142_s21, %s142_s21 }
   0x7   :  { %131 = vmatmul.mubr.msk.f32.vlgmr.msra.gmra.mrb[0].mxu0 %vm25_vm4, %v15_v5 }
   0x8   :  { %p149_p3 = por %p148_p2, %p147_p1 }
   0xa   :  { %p150_p4 = pnand %p149_p3, %p143_p0 }
  0xda   :  { %v99_v7 = vpop.f32.mrb[0].mxu0 }
  0xdb   :  { %v100_v8 = vadd.f32 %v120_v6, %v99_v7  ;;  %v132_v9 = vpop.f32.mrb[1].mxu0 }
  0xdd   :  { %v103_v10 = vmax.f32 %v100_v8, 0.0 }
  0xdf   :  { %105 = vst.msk [vmem:[#allocation2] sm:$0xff] %vm104_vm5, %v103_v10 }
  0xe0   :  { %153 = shalt.err (!%p150_p4)
}
  0xe1   :  { %s154_s2 = scalar_lea.hbm %s218_s3, 128 }
  0xe2   :  { %p155_p5 = scmp.ne.s32.totalorder %s218_s3, %s154_s2  ;;  %p158_p6 = scmp.lt.u32.totalorder %s154_s2, %s218_s3 }
  0xe4   :  { %p160_p7 = pnand %p158_p6, %p155_p5 }
  0xe6   :  { %163 = shalt.err (!%p160_p7)
}
  0xe7   :  { %115 = dma.vmem_to_hbm [thread:$0]  %s113_s20, 128, %s218_s3, [#allocation3]  }
  0xe8   :  { %164 = dma.done.wait [#allocation3], 128  }
  0xe9   :  { %165 = vsyncadd [#allocation3], 4294967168 }
  0xea   :  { %119 = vsyncpa [#allocation3], 1 }

</bundles_post_ra>
